<compile_context>
chip_gen: v7x
topology: tpu7x:2x2x1
jax: 0.10.0
libtpu: 0.0.40
codegen_flags: <defaults>
</compile_context>

<pallas_src>
from functools import partial

import jax
import jax.numpy as jnp
from jax.experimental import pallas as pl
from jax.experimental.pallas import tpu as pltpu


def _cdiv(a, b):
    return -(-a // b)


def _round_up(x, m):
    return _cdiv(x, m) * m


def _sublane(dtype):
    return {4: 8, 2: 16, 1: 32}[jnp.dtype(dtype).itemsize]


def _usable_vmem_bytes():
    """Generation-aware VMEM budget: ~70% of physical per-core VMEM."""
    phys = 64 * 1024 * 1024                     # conservative default (v7x per TC)
    try:
        info = pltpu.get_tpu_info()
        phys = int(getattr(info, "vmem_capacity_bytes", phys))
    except Exception:
        pass
    return max(16 * 1024 * 1024, int(phys * 0.7))


def _dice_partials_kernel(pred_ref, tgt_ref, out_ref, *, binary, tile_rows,
                          hw128, n_sp, split, kernel_ragged, sentinel):
    g = pl.program_id(0)            # fused (batch, spatial-split) index
    s = pl.program_id(1)            # spatial tile index within the split

    @pl.when(s == 0)
    def _():
        out_ref[...] = jnp.zeros_like(out_ref)

    logits = pred_ref[0].astype(jnp.float32)        # (C, Tr, 128)
    tgt = tgt_ref[0].astype(jnp.int32)              # (Tr, 128)

    def accumulate(lg, tg):
        if binary:
            # C == 1: soft = [sigmoid(p), 1 - sigmoid(p)], onehot = [t==1, t==0]
            p = lg[0]                                            # (Tr, 128)
            sig = jax.nn.sigmoid(p)
            t1 = tg == 1
            t0 = tg == 0
            s_sig = jnp.sum(sig, axis=0, keepdims=True)          # (1, 128)
            n_pos = jnp.sum(t1.astype(jnp.float32), axis=0, keepdims=True)
            n_neg = jnp.sum(t0.astype(jnp.float32), axis=0, keepdims=True)
            i_pos = jnp.sum(jnp.where(t1, sig, 0.0), axis=0, keepdims=True)
            i_neg = jnp.sum(jnp.where(t0, 1.0 - sig, 0.0), axis=0, keepdims=True)
            inter_tile = jnp.concatenate([i_pos, i_neg], axis=0)            # (2,128)
            card_tile = jnp.concatenate(
                [s_sig + n_pos, (float(tile_rows) - s_sig) + n_neg], axis=0)
        else:
            nc = lg.shape[0]
            # softmax over the leading class axis: elementwise across slabs
            m = jnp.max(lg, axis=0, keepdims=True)               # (1, Tr, 128)
            e = jnp.exp(lg - m)                                  # EUP
            denom = jnp.sum(e, axis=0, keepdims=True)
            soft = e * pl.reciprocal(denom, approx=False)        # exact: tight tol
            card_soft = jnp.sum(soft, axis=1)                    # (C, 128)
            if nc <= 32:
                # unrolled scalar compares: no (C,Tr,128) iota / one-hot temp
                inter_rows, cnt_rows = [], []
                for c in range(nc):
                    hit = tg == c                                # (Tr, 128) bool
                    inter_rows.append(jnp.sum(jnp.where(hit, soft[c], 0.0),
                                              axis=0, keepdims=True))
                    cnt_rows.append(jnp.sum(hit.astype(jnp.float32),
                                            axis=0, keepdims=True))
                inter_tile = jnp.concatenate(inter_rows, axis=0)             # (C,128)
                card_tile = card_soft + jnp.concatenate(cnt_rows, axis=0)
            else:
                cls = jax.lax.broadcasted_iota(jnp.int32, (nc, tile_rows, 128), 0)
                onehot = (cls == tg[None]).astype(jnp.float32)
                inter_tile = jnp.sum(soft * onehot, axis=1)
                card_tile = card_soft + jnp.sum(onehot, axis=1)
        out_ref[0, 0, :, :] += inter_tile
        out_ref[0, 1, :, :] += card_tile

    if kernel_ragged:
        # Only tiles whose row range extends past hw128 hold garbage rows.
        # Clamp logits/target BEFORE exp (otherwise exp(garbage) => inf/NaN);
        # their known contribution is removed in the JAX epilogue.  All other
        # tiles skip the mask work entirely.
        tile_idx = (g % split) * n_sp + s if split > 1 else s
        row_start = tile_idx * tile_rows
        is_ragged = row_start + tile_rows > hw128

        @pl.when(jnp.logical_not(is_ragged))
        def _():
            accumulate(logits, tgt)

        @pl.when(is_ragged)
        def _():
            rows = jax.lax.broadcasted_iota(jnp.int32, (tile_rows, 128), 0)
            valid = rows < (hw128 - row_start)
            lg = jnp.where(valid[None, :, :], logits, 0.0)
            tg = jnp.where(valid, tgt, sentinel)
            accumulate(lg, tg)
    else:
        accumulate(logits, tgt)


def dice_loss(predictions, target, eps=1e-7):
    if predictions.ndim != 4:
        raise ValueError(
            "Invalid input shape, we expect BxNxHxW got: {}".format(predictions.shape))
    if predictions.shape[-2:] != target.shape[-2:]:
        raise ValueError(
            "Input and target shapes must be the same got: {}".format(predictions.shape))

    B, C, H, W = predictions.shape
    if target.ndim == 4:
        target = target[:, 0]                       # mimics target.squeeze(1)
    HW = H * W
    binary = (C == 1)
    nc_out = 2 if binary else C

    # ---- dtypes: keep pred native (bf16/f16/f32); compact int8 target ----
    if predictions.dtype not in (jnp.float32, jnp.bfloat16, jnp.float16):
        predictions = predictions.astype(jnp.float32)
    pred_dtype = predictions.dtype
    if binary:
        tgt_dtype, sentinel = jnp.int8, 2
    elif C < 128:
        tgt_dtype, sentinel = jnp.int8, C           # class ids <= 127
    else:
        tgt_dtype, sentinel = jnp.int32, C
    pred_isize = jnp.dtype(pred_dtype).itemsize
    tgt_isize = jnp.dtype(tgt_dtype).itemsize
    row_align = max(_sublane(pred_dtype), _sublane(tgt_dtype))

    # ---- flatten spatial to lane-dense (rows, 128): free when HW % 128 == 0 ----
    hw128 = _cdiv(HW, 128)
    pred_flat = predictions.reshape(B, C, HW)
    tgt_flat = target.reshape(B, HW).astype(tgt_dtype)
    if HW % 128 != 0:
        # only the (rare) non-128-aligned case pays for a padded pred copy;
        # padded pixels carry (logit=0, class=sentinel) and are corrected in
        # the epilogue like every other phantom pixel.
        pad = hw128 * 128 - HW
        pred_flat = jnp.pad(pred_flat, ((0, 0), (0, 0), (0, pad)))
        tgt_flat = jnp.pad(tgt_flat, ((0, 0), (0, pad)), constant_values=sentinel)
    pred4 = pred_flat.reshape(B, C, hw128, 128)
    tgt3 = tgt_flat.reshape(B, hw128, 128)

    # ---- v7x: give both TensorCores work when there is only one batch ----
    split = 2 if (B == 1 and hw128 >= 2 * row_align) else 1

    # ---- tile sizing: big blocks under a generation-aware VMEM budget ----
    usable = _usable_vmem_bytes()
    # double-buffered inputs + ~6 full-size f32 temporaries + misc, per row
    bytes_per_row = 128 * (2 * C * pred_isize + 2 * tgt_isize + 6 * C * 4 + 8)
    fixed = 2 * (2 * nc_out * 128 * 4) + (2 << 20)
    rows_vmem = max(row_align, (usable - fixed) // bytes_per_row)
    rows_pred = max(row_align, (8 * 1024 * 1024) // (C * 128 * pred_isize))
    tile_rows = min(int(rows_vmem), int(rows_pred), 2048)
    tile_rows = max(row_align, (tile_rows // row_align) * row_align)
    if split > 1:
        tile_rows = min(tile_rows, _round_up(_cdiv(hw128, split), row_align))
    elif hw128 <= tile_rows:
        tile_rows = hw128                          # full-extent block (always legal)

    n_total = _cdiv(hw128, tile_rows)              # row-blocks actually backed by data
    n_sp = _cdiv(n_total, split)                   # grid tiles per (batch, split)
    coverage_rows = split * n_sp * tile_rows
    kernel_ragged = coverage_rows > hw128          # static: any tile needs masking?
    phantom_per_batch = coverage_rows * 128 - HW   # pixels with known pad value

    kernel = partial(_dice_partials_kernel, binary=binary, tile_rows=tile_rows,
                     hw128=hw128, n_sp=n_sp, split=split,
                     kernel_ragged=kernel_ragged, sentinel=sentinel)

    last_block = n_total - 1
    if split > 1:
        def _batch(g):
            return g // split

        def _row(g, s):
            # fully out-of-range steps re-read the last block (memory-safe);
            # their data is fully masked inside the kernel.
            return jnp.minimum((g % split) * n_sp + s, last_block)
    else:
        def _batch(g):
            return g

        def _row(g, s):
            return s

    cost = pl.CostEstimate(
        flops=B * HW * (16 if binary else 8 * C),
        transcendentals=B * HW * (1 if binary else C + 1),
        bytes_accessed=(pred4.size * pred_isize + tgt3.size * tgt_isize
                        + B * split * 2 * nc_out * 128 * 4),
    )

    partials = pl.pallas_call(
        kernel,
        out_shape=jax.ShapeDtypeStruct((B * split, 2, nc_out, 128), jnp.float32),
        grid_spec=pltpu.PrefetchScalarGridSpec(
            num_scalar_prefetch=0,
            grid=(B * split, n_sp),
            in_specs=[
                pl.BlockSpec((1, C, tile_rows, 128),
                             lambda g, s: (_batch(g), 0, _row(g, s), 0)),
                pl.BlockSpec((1, tile_rows, 128),
                             lambda g, s: (_batch(g), _row(g, s), 0)),
            ],
            out_specs=pl.BlockSpec((1, 2, nc_out, 128),
                                   lambda g, s: (g, 0, 0, 0)),
        ),
        compiler_params=pltpu.CompilerParams(
            dimension_semantics=("parallel", "arbitrary"),
            vmem_limit_bytes=int(usable)),
        cost_estimate=cost,
    )(pred4, tgt3)

    # ---- tiny JAX epilogue: combine per-(batch,split)/per-lane partials ----
    inter = jnp.sum(partials[:, 0], axis=(0, 2))        # (nc_out,)
    card = jnp.sum(partials[:, 1], axis=(0, 2))         # (nc_out,)
    if phantom_per_batch > 0:
        # every phantom pixel contributed soft = 1/nc_out and onehot = 0
        card = card - (B * phantom_per_batch) / nc_out
    dice = 2.0 * inter / (card + eps)
    return 1.0 - jnp.mean(dice)


def _dice_loss_ref(predictions, target, eps=1e-7):
    """Pure-JAX reference mirroring the PyTorch forward."""
    B, C, H, W = predictions.shape
    if target.ndim == 4:
        target = target[:, 0]
    preds = predictions.astype(jnp.float32)
    if C == 1:
        pos = jax.nn.sigmoid(preds)
        soft = jnp.concatenate([pos, 1.0 - pos], axis=1)
        onehot = jnp.stack([(target == 1), (target == 0)], axis=1).astype(jnp.float32)
    else:
        soft = jax.nn.softmax(preds, axis=1)
        onehot = jax.nn.one_hot(target, C, axis=1, dtype=jnp.float32)
    inter = jnp.sum(soft * onehot, axis=(0, 2, 3))
    card = jnp.sum(soft + onehot, axis=(0, 2, 3))
    return 1.0 - jnp.mean(2.0 * inter / (card + eps))


if __name__ == "__main__":
    key = jax.random.PRNGKey(0)
    kp, kt = jax.random.split(key)

    cases = []

    # multiclass, 128-aligned spatial (no padding anywhere)
    B, C, H, W = 2, 4, 16, 16
    cases.append((jax.random.normal(kp, (B, C, H, W), dtype=jnp.float32),
                  jax.random.randint(kt, (B, H, W), 0, C, dtype=jnp.int32)))

    # binary (C == 1) specialized path
    cases.append((jax.random.normal(kp, (B, 1, H, W), dtype=jnp.float32),
                  jax.random.randint(kt, (B, H, W), 0, 2, dtype=jnp.int32)))

    # B == 1: two-way spatial split, ragged last tile, epilogue card correction
    cases.append((jax.random.normal(kp, (1, 3, 144, 144), dtype=jnp.float32),
                  jax.random.randint(kt, (1, 144, 144), 0, 3, dtype=jnp.int32)))

    # H*W not a multiple of 128: sentinel-padded path
    cases.append((jax.random.normal(kp, (2, 5, 10, 10), dtype=jnp.float32),
                  jax.random.randint(kt, (2, 10, 10), 0, 5, dtype=jnp.int32)))

    # larger spatial extent: exercises the big-tile (multi-MiB block) path
    cases.append((jax.random.normal(kp, (2, 4, 512, 512), dtype=jnp.float32),
                  jax.random.randint(kt, (2, 512, 512), 0, 4, dtype=jnp.int32)))

    for pred_i, tgt_i in cases:
        got = dice_loss(pred_i, tgt_i)
        jax.block_until_ready(got)
        want = _dice_loss_ref(pred_i, tgt_i)
        assert jnp.allclose(got, want, atol=1e-5, rtol=1e-5), (pred_i.shape, got, want)

    print("KERNEL_OK")
</pallas_src>

<mosaic_0001>
module attributes {stable_mosaic.version = 11 : i64} {
  func.func @_dice_partials_kernel(%arg0: i32, %arg1: i32, %arg2: memref<1x4x2x128xf32, #tpu.memory_space<vmem>>, %arg3: memref<1x2x128xi8, #tpu.memory_space<vmem>>, %arg4: memref<1x2x4x128xf32, #tpu.memory_space<vmem>>) attributes {dimension_semantics = [#tpu.dimension_semantics<parallel>, #tpu.dimension_semantics<arbitrary>], iteration_bounds = array<i64: 2, 1>, scalar_prefetch = 0 : i64, scratch_operands = 0 : i64, tpu.core_type = #tpu.core_type<tc>, window_params = [{transform_indices = @transform_0, window_bounds = array<i64: 1, 4, 2, 128>}, {transform_indices = @transform_1, window_bounds = array<i64: 1, 2, 128>}, {transform_indices = @transform_2, window_bounds = array<i64: 1, 2, 4, 128>}]} {
    %c0_i32 = arith.constant 0 : i32
    %0 = arith.cmpi eq, %arg1, %c0_i32 : i32
    %1 = arith.extui %0 : i1 to i32
    %c0_i32_0 = arith.constant 0 : i32
    %2 = arith.cmpi ne, %1, %c0_i32_0 : i32
    scf.if %2 {
      %cst_37 = arith.constant 0.000000e+00 : f32
      %82 = vector.broadcast %cst_37 : f32 to vector<1x2x4x128xf32>
      %c0_38 = arith.constant 0 : index
      %c0_39 = arith.constant 0 : index
      %c0_40 = arith.constant 0 : index
      %c0_41 = arith.constant 0 : index
      %83 = vector.load %arg4[%c0_38, %c0_39, %c0_40, %c0_41] : memref<1x2x4x128xf32, #tpu.memory_space<vmem>>, vector<1x2x4x128xf32>
      tpu.vector_store %arg4[%c0_38, %c0_39, %c0_40, %c0_41], %82 {strides = array<i32>} : memref<1x2x4x128xf32, #tpu.memory_space<vmem>>, vector<1x2x4x128xf32>,
    } else {
    }
    %c0 = arith.constant 0 : index
    %c0_1 = arith.constant 0 : index
    %c0_2 = arith.constant 0 : index
    %c0_3 = arith.constant 0 : index
    %3 = vector.load %arg2[%c0, %c0_1, %c0_2, %c0_3] : memref<1x4x2x128xf32, #tpu.memory_space<vmem>>, vector<1x4x2x128xf32>
    %4 = vector.shape_cast %3 : vector<1x4x2x128xf32> to vector<4x2x128xf32>
    %c0_4 = arith.constant 0 : index
    %c0_5 = arith.constant 0 : index
    %c0_6 = arith.constant 0 : index
    %5 = vector.load %arg3[%c0_4, %c0_5, %c0_6] : memref<1x2x128xi8, #tpu.memory_space<vmem>>, vector<1x2x128xi8>
    %6 = vector.shape_cast %5 : vector<1x2x128xi8> to vector<2x128xi8>
    %7 = arith.extsi %6 : vector<2x128xi8> to vector<2x128xi32>
    %cst = arith.constant dense<0xFF800000> : vector<2x128xf32>
    %8 = vector.multi_reduction <maximumf>, %4, %cst [0] : vector<4x2x128xf32> to vector<2x128xf32>
    %9 = vector.shape_cast %8 : vector<2x128xf32> to vector<1x2x128xf32>
    %10 = vector.broadcast %9 : vector<1x2x128xf32> to vector<4x2x128xf32>
    %11 = arith.subf %4, %10 : vector<4x2x128xf32>
    %12 = math.exp %11 : vector<4x2x128xf32>
    %cst_7 = arith.constant dense<0.000000e+00> : vector<2x128xf32>
    %13 = vector.multi_reduction <add>, %12, %cst_7 [0] : vector<4x2x128xf32> to vector<2x128xf32>
    %14 = vector.shape_cast %13 : vector<2x128xf32> to vector<1x2x128xf32>
    %15 = tpu.reciprocal %14 : vector<1x2x128xf32> -> vector<1x2x128xf32>
    %16 = vector.broadcast %15 : vector<1x2x128xf32> to vector<4x2x128xf32>
    %17 = arith.mulf %12, %16 : vector<4x2x128xf32>
    %cst_8 = arith.constant dense<0.000000e+00> : vector<4x128xf32>
    %18 = vector.multi_reduction <add>, %17, %cst_8 [1] : vector<4x2x128xf32> to vector<4x128xf32>
    %c0_i32_9 = arith.constant 0 : i32
    %19 = vector.broadcast %c0_i32_9 : i32 to vector<2x128xi32>
    %20 = arith.cmpi eq, %7, %19 : vector<2x128xi32>
    %21 = vector.extract_strided_slice %17 {offsets = [0, 0, 0], sizes = [1, 2, 128], strides = [1, 1, 1]} : vector<4x2x128xf32> to vector<1x2x128xf32>
    %22 = vector.shape_cast %21 : vector<1x2x128xf32> to vector<2x128xf32>
    %cst_10 = arith.constant 0.000000e+00 : f32
    %23 = vector.broadcast %cst_10 : f32 to vector<2x128xf32>
    %24 = arith.select %20, %22, %23 : vector<2x128xi1>, vector<2x128xf32>
    %cst_11 = arith.constant dense<0.000000e+00> : vector<128xf32>
    %25 = vector.multi_reduction <add>, %24, %cst_11 [0] : vector<2x128xf32> to vector<128xf32>
    %26 = vector.shape_cast %25 : vector<128xf32> to vector<1x128xf32>
    %27 = arith.extui %20 : vector<2x128xi1> to vector<2x128xi32>
    %28 = arith.sitofp %27 : vector<2x128xi32> to vector<2x128xf32>
    %cst_12 = arith.constant dense<0.000000e+00> : vector<128xf32>
    %29 = vector.multi_reduction <add>, %28, %cst_12 [0] : vector<2x128xf32> to vector<128xf32>
    %30 = vector.shape_cast %29 : vector<128xf32> to vector<1x128xf32>
    %c1_i32 = arith.constant 1 : i32
    %31 = vector.broadcast %c1_i32 : i32 to vector<2x128xi32>
    %32 = arith.cmpi eq, %7, %31 : vector<2x128xi32>
    %33 = vector.extract_strided_slice %17 {offsets = [1, 0, 0], sizes = [1, 2, 128], strides = [1, 1, 1]} : vector<4x2x128xf32> to vector<1x2x128xf32>
    %34 = vector.shape_cast %33 : vector<1x2x128xf32> to vector<2x128xf32>
    %cst_13 = arith.constant 0.000000e+00 : f32
    %35 = vector.broadcast %cst_13 : f32 to vector<2x128xf32>
    %36 = arith.select %32, %34, %35 : vector<2x128xi1>, vector<2x128xf32>
    %cst_14 = arith.constant dense<0.000000e+00> : vector<128xf32>
    %37 = vector.multi_reduction <add>, %36, %cst_14 [0] : vector<2x128xf32> to vector<128xf32>
    %38 = vector.shape_cast %37 : vector<128xf32> to vector<1x128xf32>
    %39 = arith.extui %32 : vector<2x128xi1> to vector<2x128xi32>
    %40 = arith.sitofp %39 : vector<2x128xi32> to vector<2x128xf32>
    %cst_15 = arith.constant dense<0.000000e+00> : vector<128xf32>
    %41 = vector.multi_reduction <add>, %40, %cst_15 [0] : vector<2x128xf32> to vector<128xf32>
    %42 = vector.shape_cast %41 : vector<128xf32> to vector<1x128xf32>
    %c2_i32 = arith.constant 2 : i32
    %43 = vector.broadcast %c2_i32 : i32 to vector<2x128xi32>
    %44 = arith.cmpi eq, %7, %43 : vector<2x128xi32>
    %45 = vector.extract_strided_slice %17 {offsets = [2, 0, 0], sizes = [1, 2, 128], strides = [1, 1, 1]} : vector<4x2x128xf32> to vector<1x2x128xf32>
    %46 = vector.shape_cast %45 : vector<1x2x128xf32> to vector<2x128xf32>
    %cst_16 = arith.constant 0.000000e+00 : f32
    %47 = vector.broadcast %cst_16 : f32 to vector<2x128xf32>
    %48 = arith.select %44, %46, %47 : vector<2x128xi1>, vector<2x128xf32>
    %cst_17 = arith.constant dense<0.000000e+00> : vector<128xf32>
    %49 = vector.multi_reduction <add>, %48, %cst_17 [0] : vector<2x128xf32> to vector<128xf32>
    %50 = vector.shape_cast %49 : vector<128xf32> to vector<1x128xf32>
    %51 = arith.extui %44 : vector<2x128xi1> to vector<2x128xi32>
    %52 = arith.sitofp %51 : vector<2x128xi32> to vector<2x128xf32>
    %cst_18 = arith.constant dense<0.000000e+00> : vector<128xf32>
    %53 = vector.multi_reduction <add>, %52, %cst_18 [0] : vector<2x128xf32> to vector<128xf32>
    %54 = vector.shape_cast %53 : vector<128xf32> to vector<1x128xf32>
    %c3_i32 = arith.constant 3 : i32
    %55 = vector.broadcast %c3_i32 : i32 to vector<2x128xi32>
    %56 = arith.cmpi eq, %7, %55 : vector<2x128xi32>
    %57 = vector.extract_strided_slice %17 {offsets = [3, 0, 0], sizes = [1, 2, 128], strides = [1, 1, 1]} : vector<4x2x128xf32> to vector<1x2x128xf32>
    %58 = vector.shape_cast %57 : vector<1x2x128xf32> to vector<2x128xf32>
    %cst_19 = arith.constant 0.000000e+00 : f32
    %59 = vector.broadcast %cst_19 : f32 to vector<2x128xf32>
    %60 = arith.select %56, %58, %59 : vector<2x128xi1>, vector<2x128xf32>
    %cst_20 = arith.constant dense<0.000000e+00> : vector<128xf32>
    %61 = vector.multi_reduction <add>, %60, %cst_20 [0] : vector<2x128xf32> to vector<128xf32>
    %62 = vector.shape_cast %61 : vector<128xf32> to vector<1x128xf32>
    %63 = arith.extui %56 : vector<2x128xi1> to vector<2x128xi32>
    %64 = arith.sitofp %63 : vector<2x128xi32> to vector<2x128xf32>
    %cst_21 = arith.constant dense<0.000000e+00> : vector<128xf32>
    %65 = vector.multi_reduction <add>, %64, %cst_21 [0] : vector<2x128xf32> to vector<128xf32>
    %66 = vector.shape_cast %65 : vector<128xf32> to vector<1x128xf32>
    %67 = tpu.concatenate %26, %38, %50, %62 in 0 : vector<1x128xf32>, vector<1x128xf32>, vector<1x128xf32>, vector<1x128xf32> -> vector<4x128xf32>
    %68 = tpu.concatenate %30, %42, %54, %66 in 0 : vector<1x128xf32>, vector<1x128xf32>, vector<1x128xf32>, vector<1x128xf32> -> vector<4x128xf32>
    %69 = arith.addf %18, %68 : vector<4x128xf32>
    %c0_22 = arith.constant 0 : index
    %c0_23 = arith.constant 0 : index
    %c0_24 = arith.constant 0 : index
    %c0_25 = arith.constant 0 : index
    %70 = vector.load %arg4[%c0_22, %c0_23, %c0_24, %c0_25] : memref<1x2x4x128xf32, #tpu.memory_space<vmem>>, vector<1x1x4x128xf32>
    %71 = vector.shape_cast %70 : vector<1x1x4x128xf32> to vector<4x128xf32>
    %72 = arith.addf %71, %67 : vector<4x128xf32>
    %c0_26 = arith.constant 0 : index
    %c0_27 = arith.constant 0 : index
    %c0_28 = arith.constant 0 : index
    %c0_29 = arith.constant 0 : index
    %73 = vector.load %arg4[%c0_26, %c0_27, %c0_28, %c0_29] : memref<1x2x4x128xf32, #tpu.memory_space<vmem>>, vector<1x1x4x128xf32>
    %74 = vector.shape_cast %73 : vector<1x1x4x128xf32> to vector<4x128xf32>
    %75 = vector.shape_cast %72 : vector<4x128xf32> to vector<1x1x4x128xf32>
    tpu.vector_store %arg4[%c0_26, %c0_27, %c0_28, %c0_29], %75 {strides = array<i32>} : memref<1x2x4x128xf32, #tpu.memory_space<vmem>>, vector<1x1x4x128xf32>,
    %c0_30 = arith.constant 0 : index
    %c1 = arith.constant 1 : index
    %c0_31 = arith.constant 0 : index
    %c0_32 = arith.constant 0 : index
    %76 = vector.load %arg4[%c0_30, %c1, %c0_31, %c0_32] : memref<1x2x4x128xf32, #tpu.memory_space<vmem>>, vector<1x1x4x128xf32>
    %77 = vector.shape_cast %76 : vector<1x1x4x128xf32> to vector<4x128xf32>
    %78 = arith.addf %77, %69 : vector<4x128xf32>
    %c0_33 = arith.constant 0 : index
    %c1_34 = arith.constant 1 : index
    %c0_35 = arith.constant 0 : index
    %c0_36 = arith.constant 0 : index
    %79 = vector.load %arg4[%c0_33, %c1_34, %c0_35, %c0_36] : memref<1x2x4x128xf32, #tpu.memory_space<vmem>>, vector<1x1x4x128xf32>
    %80 = vector.shape_cast %79 : vector<1x1x4x128xf32> to vector<4x128xf32>
    %81 = vector.shape_cast %78 : vector<4x128xf32> to vector<1x1x4x128xf32>
    tpu.vector_store %arg4[%c0_33, %c1_34, %c0_35, %c0_36], %81 {strides = array<i32>} : memref<1x2x4x128xf32, #tpu.memory_space<vmem>>, vector<1x1x4x128xf32>,
    return
  }
  func.func @transform_0(%arg0: i32, %arg1: i32) -> (i32, i32, i32, i32) {
    %c0_i32 = arith.constant 0 : i32
    %c0_i32_0 = arith.constant 0 : i32
    %c0_i32_1 = arith.constant 0 : i32
    return %arg0, %c0_i32, %arg1, %c0_i32_0 : i32, i32, i32, i32
  }
  func.func @transform_1(%arg0: i32, %arg1: i32) -> (i32, i32, i32) {
    %c0_i32 = arith.constant 0 : i32
    %c0_i32_0 = arith.constant 0 : i32
    return %arg0, %arg1, %c0_i32 : i32, i32, i32
  }
  func.func @transform_2(%arg0: i32, %arg1: i32) -> (i32, i32, i32, i32) {
    %c0_i32 = arith.constant 0 : i32
    %c0_i32_0 = arith.constant 0 : i32
    %c0_i32_1 = arith.constant 0 : i32
    %c0_i32_2 = arith.constant 0 : i32
    return %arg0, %c0_i32, %c0_i32_0, %c0_i32_1 : i32, i32, i32, i32
  }
}

</mosaic_0001>

<bundles_post_ra>
// kernel: tpu_custom_call.1
= control target key start
LH: loop header
LB: loop body
LE: loop exit
PB: predicated region body
PF: predicated region fallthrough
CT: control target
= control target key end

     0   :  { %7 = vsyncpa [#allocation3], 0  ;;  %s977_s0 = inlined_call_operand.hbm [shape: f32[2,4,2,128], index: 0, kind: input, shape index: {}]   ;;  %s978_s1 = inlined_call_operand.vmem [shape: s8[2,2,128], index: 1, kind: input, shape index: {}]   ;;  %s979_s2 = inlined_call_operand.hbm [shape: f32[2,2,4,128], index: 2, kind: output, shape index: {}]  }
   0x1   :  { %9 = vsyncpa [#allocation3 + $0x1], 0 }
   0x2   :  { %10 = vsyncpa [#allocation4], 0 }
   0x3   :  { %12 = vsyncpa [#allocation4 + $0x1], 0  ;;  %s732_s9 = smov 0   ;;  %s734_s10 = smov 0  }
   0x4   :  { %s736_s11 = smov 0   ;;  %s738_s12 = smov 0  }
   0x5   :  { %s740_s13 = smov 0   ;;  %s742_s14 = smov 0  }
   0x6 LB: > { %s496_s15 = sadd.s32 4294967295, %s708_s14   ;;  %s497_s16 = sadd.s32 4294967294, %s708_s14   ;;  %s708_s14 = sphi %s742_s14, %s18_s14   ;;  %s704_s13 = sphi %s740_s13, %s994_s13   ;;  %s700_s12 = sphi %s738_s12, %s993_s12   ;;  %s696_s11 = sphi %s736_s11, %s992_s11   ;;  %s692_s10 = sphi %s734_s10, %s991_s10   ;;  %s688_s9 = sphi %s732_s9, %s990_s9  }
   0x7   : > { %s30_s17 = sadd.s32 1, %s704_s13  ;;  %s39_s18 = sadd.s32 1, %s696_s11 }
   0x8   : > { %p32_p0 = scmp.ge.s32.totalorder %s30_s17, 2  ;;  %p46_p1 = scmp.ne.s32.totalorder %s696_s11, %s692_s10 }
   0x9   : > { %p47_p2 = scmp.eq.s32.totalorder %s708_s14, 0  ;;  %p52_p3 = scmp.ne.s32.totalorder %s692_s10, %s688_s9 }
   0xa   : > { %s996_s17 = smov (%p32_p0, %s30_s17), 0  ;;  %p53_p5 = scmp.eq.s32.totalorder %s496_s15, 0 }
   0xb   : > { %p773_p4 = por %p47_p2, %p46_p1  ;;  %s34_s20 = ssub.s32 %s704_s13, %s996_s17 }
   0xc   : > { %p104_p6 = scmp.eq.s32.totalorder %s496_s15, 1  ;;  %p37_p7 = scmp.eq.s32.totalorder %s34_s20, 0 }
   0xd   : > { %p779_p8 = por %p53_p5, %p52_p3  ;;  %p110_p10 = scmp.eq.s32.totalorder %s497_s16, 1 }
   0xe   : > { %p783_p9 = por %p104_p6, %p46_p1  ;;  %p531_p13 = scmp.lt.s32.totalorder %s708_s14, 2 }
   0xf   : > { %s788_s23 = scalar_select %p37_p7, %s696_s11, %s39_s18  }
  0x10   : > { %s983_s22 = scalar_select %p783_p9, 1, 0 }
  0x11   : > { %p790_p11 = por %p110_p10, %p52_p3  ;;  %s130_s25 = sand.u32 1, %s696_s11  }
  0x12   : > { %s500_s26 = sshll.u32 %s130_s25, 3  ;;  %s517_s27 = sshll.u32 %s704_s13, 7 }
  0x13   : > { %s984_s24 = scalar_select %p790_p11, 1, 0 }
  0x14   : > { %s801_s30 = scalar_lea.hbm %s977_s0, %s517_s27  ;;  %s134_s3 = scalar_lea.vmem [#allocation2], %s500_s26 }
  0x15   : > { %s142_s4 = sshll.u32 %s134_s3, 4  ;;  %p807_p0 = pnand %p531_p13, %p773_p4  ;;  %s803_s4 = int_to_ptr.vmem [resolvable:$true] %s142_s4 }
  0x16   : > { %s812_s6 = scalar_lea.sflag [#allocation3], %s130_s25  ;;  %s596_s7 = scalar_lea.hbm %s801_s30, 128 }
  0x17   : > { %p597_p2 = scmp.ne.s32.totalorder %s801_s30, %s596_s7  ;;  %p598_p3 = pneg %p807_p0 }
  0x18   : > { %s601_s16 = scalar_lea.hbm %s977_s0, 256  ;;  %p602_p4 = scmp.lt.u32.totalorder %s801_s30, %s977_s0 }
  0x19   : > { %p599_p5 = pnand %p598_p3, %p597_p2  ;;  %p603_p7 = scmp.lt.u32.totalorder %s601_s16, %s596_s7 }
  0x1a   : > { %p605_p13 = scmp.lt.u32.totalorder %s596_s7, %s801_s30 }
  0x1b   : > { %p600_p6 = pneg %p599_p5  ;;  %p604_p10 = por %p603_p7, %p602_p4 }
  0x1d   : > { %p606_p12 = por %p605_p13, %p604_p10 }
  0x1f   : > { %p607_p1 = pnand %p606_p12, %p600_p6 }
  0x21   : > { %610 = shalt.err (!%p607_p1)
}
  0x22   : > { %s611_s20 = scalar_lea.vmem %s803_s4, 128  ;;  %s710_s25 = smov [#allocation2]  }
  0x23   : > { %p612_p2 = scmp.ne.s32.totalorder %s803_s4, %s611_s20  ;;  %s616_s26 = sshll.u32 %s710_s25, 4  ;;  %s617_s26 = int_to_ptr.vmem [resolvable:$false] %s616_s26 }
  0x24   : > { %s618_s27 = scalar_lea.vmem %s617_s26, 256  ;;  %p619_p9 = scmp.lt.s32.totalorder %s803_s4, %s617_s26 }
  0x25   : > { %p614_p5 = pnand %p612_p2, %p598_p3  ;;  %p620_p4 = scmp.lt.s32.totalorder %s618_s27, %s611_s20 }
  0x27   : > { %p615_p11 = pneg %p614_p5  ;;  %p621_p7 = por %p620_p4, %p619_p9 }
  0x29   : > { %p622_p10 = pnand %p621_p7, %p615_p11 }
  0x2b   : > { %625 = shalt.err (!%p622_p10)
}
  0x2c   : > { %s711_s28 = smov 32   ;;  %s712_s29 = smov 2  }
  0x2d   : > { %526 = dma.hbm_to_vmem [thread:$0]  (!%p807_p0), %s801_s30, 128, %s803_s4, %s812_s6, %s711_s28, %s711_s28, %s712_s29  }
  0x2e   : > { %p159_p12 = scmp.lt.s32.totalorder %s708_s14, 3  ;;  %p986_p1 = scmp.ge.s32.totalorder %s708_s14, 1 }
  0x30   : > { %p160_p3 = pnand %p986_p1, %p159_p12 }
  0x31   : > { %s844_s3 = sand.u32 (!%p160_p3), 1, %s692_s10  }
  0x32   : > { %163 = sbr.rel (%p160_p3) target bundleno = 146 (0x92), region = 28  ;;  %s504_s7 = sshll.u32 (!%p160_p3), %s844_s3, 3 }
  0x33   : > { %s166_s8 = scalar_lea.sflag (!%p160_p3), [#allocation3], %s844_s3  ;;  %s169_s15 = scalar_lea.vmem (!%p160_p3), [#allocation2], %s504_s7 }
  0x39   : > { %679 = dma.done.wait (%p779_p8), %s166_s8, 128  }
  0x3a   : > { %681 = vsyncadd (%p779_p8), %s166_s8, 4294967168  ;;  %p196_p9 = scmp.lt.s32.totalorder %s700_s12, 1  ;;  %s853_s30 = scalar_lea.vmem [#allocation5], %s504_s7  ;;  %v713_v0 = vmov 0.0   ;;  %vm214_vm0 = vcmask 1041408   ;;  %vm346_vm5 = vcmask 1040384  }
  0x3b   : > { %206 = vst [vmem:[%s853_s30] sm:$0xf] %v713_v0  ;;  %207 = vst [vmem:[%s853_s30 + $0x4] sm:$0xf] %v713_v0  ;;  %v208_v1 = vld [vmem:[%s169_s15] sm:$0x3]  ;;  %vm349_vm6 = vcmask 1042432  }
  0x3c   : > { %s197_s4 = scalar_select %p196_p9, %s700_s12, 1  ;;  %v209_v2 = vld [vmem:[%s169_s15 + $0x2] sm:$0x3]  ;;  %v210_v3 = vld [vmem:[%s169_s15 + $0x4] sm:$0x3]  ;;  %v215_v6 = vsel %vm214_vm0, %v208_v1, -inf }
  0x3d   : > { %v211_v4 = vld [vmem:[%s169_s15 + $0x6] sm:$0x3]  ;;  %v216_v7 = vsel %vm214_vm0, %v209_v2, -inf  ;;  %v217_v9 = vsel %vm214_vm0, %v210_v3, -inf  ;;  %vm376_vm7 = vcmask 1041409   ;;  %vm379_vm8 = vcmask 1042434  }
  0x3e   : > { %s201_s16 = scalar_lea.vmem %s978_s1, %s197_s4  ;;  %v218_v10 = vsel %vm214_vm0, %v211_v4, -inf  ;;  %v219_v11 = vmax.f32 %v215_v6, %v216_v7  ;;  %vm382_vm9 = vcmask 1043459   ;;  %s518_s21 = sshll.u32 %s700_s12, 7 }
  0x3f   : > { %v212_v5 = vld [vmem:[%s201_s16] sm:$0x1]  ;;  %v220_v12 = vmax.f32 %v217_v9, %v218_v10  ;;  %s401_s18 = sshll.u32 %s853_s30, 4  ;;  %s925_s25 = scalar_lea.hbm %s979_s2, %s518_s21  ;;  %s927_s18 = int_to_ptr.vmem [resolvable:$true] %s401_s18 }
  0x40   : > { %v863_v8 = vunpack.c.0.s8 %v212_v5  ;;  %s388_s26 = scalar_lea.sflag [#allocation4], %s844_s3  ;;  %s626_s27 = scalar_lea.vmem %s927_s18, 128 }
  0x41   : > { %v221_v13 = vmax.f32 %v219_v11, %v220_v12  ;;  %p627_p8 = scmp.ne.s32.totalorder %s927_s18, %s626_s27  ;;  %p987_p11 = scmp.ne.s32.totalorder %s983_s22, 0 }
  0x42   : > { %vm274_vm1 = vcmp.eq.s32.totalorder %v863_v8, 0  ;;  %vm292_vm2 = vcmp.eq.s32.totalorder %v863_v8, 1  ;;  %vm310_vm3 = vcmp.eq.s32.totalorder %v863_v8, 2  ;;  %vm328_vm4 = vcmp.eq.s32.totalorder %v863_v8, 3  ;;  %s714_s12 = smov [#allocation5]  }
  0x43   : > { %v506_v14 = vsel %vm274_vm1, 1.0, %v713_v0  ;;  %v507_v15 = vsel %vm292_vm2, 1.0, %v713_v0  ;;  %v508_v16 = vsel %vm310_vm3, 1.0, %v713_v0  ;;  %v222_v19 = vsub.f32 %v208_v1, %v221_v13  ;;  %p628_p0 = pnand %p627_p8, %p987_p11  ;;  %s630_s28 = sshll.u32 %s714_s12, 4  ;;  %s631_s28 = int_to_ptr.vmem [resolvable:$false] %s630_s28 }
  0x44   : > { %v285_v17 = vsel %vm214_vm0, %v506_v14, 0.0  ;;  %v303_v18 = vsel %vm214_vm0, %v507_v15, 0.0  ;;  %v223_v20 = vsub.f32 %v209_v2, %v221_v13  ;;  %v224_v21 = vsub.f32 %v210_v3, %v221_v13  ;;  %s632_s29 = scalar_lea.vmem %s631_s28, 256  ;;  %p633_p13 = scmp.lt.s32.totalorder %s927_s18, %s631_s28 }
  0x45   : > { %v225_v22 = vsub.f32 %v211_v4, %v221_v13  ;;  %v286_v23 = vrot.slane %v285_v17, 4  ;;  %v304_v24 = vrot.slane %v303_v18, 4  ;;  %v321_v25 = vsel %vm214_vm0, %v508_v16, 0.0  ;;  %p629_p6 = pneg %p628_p0  ;;  %p634_p2 = scmp.lt.s32.totalorder %s632_s29, %s626_s27 }
  0x46   : > { %v509_v26 = vsel %vm328_vm4, 1.0, %v713_v0  ;;  %v226_v27 = vmul.f32 1.442695, %v222_v19  ;;  %v228_v28 = vmul.f32 1.442695, %v223_v20  ;;  %v322_v31 = vrot.slane %v321_v25, 4 }
  0x47   : > { %v230_v29 = vmul.f32 1.442695, %v224_v21  ;;  %v232_v30 = vmul.f32 1.442695, %v225_v22  ;;  %v339_v32 = vsel %vm214_vm0, %v509_v26, 0.0  ;;  %v287_v33 = vadd.f32 %v286_v23, %v285_v17  ;;  %p635_p5 = por %p634_p2, %p633_p13 }
  0x48   : > { %586 = vpow2.f32 %v226_v27  ;;  %v305_v34 = vadd.f32 %v304_v24, %v303_v18  ;;  %v340_v35 = vrot.slane %v339_v32, 4  ;;  %v323_v36 = vadd.f32 %v322_v31, %v321_v25 }
  0x49   : > { %588 = vpow2.f32 %v228_v28  ;;  %v288_v37 = vrot.slane %v287_v33, 2  ;;  %p636_p4 = pnand %p635_p5, %p629_p6 }
  0x4a   : > { %590 = vpow2.f32 %v230_v29  ;;  %v306_v38 = vrot.slane %v305_v34, 2  ;;  %v341_v39 = vadd.f32 %v340_v35, %v339_v32  ;;  %v324_v40 = vrot.slane %v323_v36, 2 }
  0x4b   : > { %592 = vpow2.f32 %v232_v30  ;;  %v289_v42 = vadd.f32 %v288_v37, %v287_v33 }
  0x4c   : > { %v307_v43 = vadd.f32 %v306_v38, %v305_v34  ;;  %v342_v48 = vrot.slane %v341_v39, 2  ;;  %v325_v52 = vadd.f32 %v324_v40, %v323_v36 }
  0x4d   : > { %v290_v54 = vrot.slane %v289_v42, 1 }
  0x4e   : > { %v308_v55 = vrot.slane %v307_v43, 1  ;;  %v343_v57 = vadd.f32 %v342_v48, %v341_v39  ;;  %v326_v59 = vrot.slane %v325_v52, 1 }
  0x4f   : > { %v291_v60 = vadd.f32 %v290_v54, %v289_v42 }
  0x50   : > { %v309_v61 = vadd.f32 %v308_v55, %v307_v43  ;;  %v344_v62 = vrot.slane %v343_v57, 1  ;;  %v327_v63 = vadd.f32 %v326_v59, %v325_v52 }
  0x52   : > { %v587_v41 = vpop.eup %586  ;;  %v351_v0 = vsel %vm346_vm5, %v291_v60, %v309_v61  ;;  %v345_v1 = vadd.f32 %v344_v62, %v343_v57 }
  0x53   : > { %v589_v44 = vpop.eup %588  ;;  %v234_v45 = vsel %vm214_vm0, %v587_v41, 0.0  ;;  %v352_v2 = vsel %vm214_vm0, %v351_v0, %v327_v63 }
  0x54   : > { %v591_v46 = vpop.eup %590  ;;  %v235_v47 = vsel %vm214_vm0, %v589_v44, 0.0  ;;  %v890_v3 = vsel %vm349_vm6, %v352_v2, %v345_v1 }
  0x55   : > { %v593_v49 = vpop.eup %592  ;;  %v236_v50 = vadd.f32 %v235_v47, %v234_v45  ;;  %v237_v51 = vsel %vm214_vm0, %v591_v46, 0.0  ;;  %v355_v10 = vrot.slane %v890_v3, 1  ;;  %v356_v11 = vrot.slane %v890_v3, 2 }
  0x56   : > { %v239_v53 = vsel %vm214_vm0, %v593_v49, 0.0 }
  0x57   : > { %v238_v56 = vadd.f32 %v237_v51, %v236_v50 }
  0x59   : > { %v240_v58 = vadd.f32 %v239_v53, %v238_v56 }
  0x5b   : > { %594 = vrcp.f32 %v240_v58 }
  0x65   : > { %v595_v4 = vpop.eup %594 }
  0x66   : > { %v242_v5 = vmul.f32 %v595_v4, %v587_v41  ;;  %v243_v6 = vmul.f32 %v595_v4, %v589_v44  ;;  %v244_v7 = vmul.f32 %v595_v4, %v591_v46  ;;  %v245_v9 = vmul.f32 %v595_v4, %v593_v49 }
  0x68   : > { %v253_v12 = vsel %vm214_vm0, %v243_v6, 0.0  ;;  %v275_v13 = vsel %vm274_vm1, %v242_v5, 0.0  ;;  %v293_v14 = vsel %vm292_vm2, %v243_v6, 0.0  ;;  %v311_v15 = vsel %vm310_vm3, %v244_v7, 0.0 }
  0x69   : > { %v254_v16 = vrot.slane %v253_v12, 4  ;;  %v276_v17 = vsel %vm214_vm0, %v275_v13, 0.0  ;;  %v294_v18 = vsel %vm214_vm0, %v293_v14, 0.0  ;;  %v246_v19 = vsel %vm214_vm0, %v242_v5, 0.0 }
  0x6a   : > { %v277_v20 = vrot.slane %v276_v17, 4  ;;  %v295_v21 = vrot.slane %v294_v18, 4  ;;  %v247_v22 = vrot.slane %v246_v19, 4  ;;  %v312_v23 = vsel %vm214_vm0, %v311_v15, 0.0 }
  0x6b   : > { %v313_v24 = vrot.slane %v312_v23, 4  ;;  %v329_v25 = vsel %vm328_vm4, %v245_v9, 0.0  ;;  %v255_v26 = vadd.f32 %v254_v16, %v253_v12  ;;  %v260_v27 = vsel %vm214_vm0, %v244_v7, 0.0  ;;  %v366_v12 = vld [vmem:[%s853_s30] sm:$0xf] }
  0x6c   : > { %v248_v28 = vadd.f32 %v247_v22, %v246_v19  ;;  %v278_v29 = vadd.f32 %v277_v20, %v276_v17  ;;  %v296_v30 = vadd.f32 %v295_v21, %v294_v18  ;;  %v330_v31 = vsel %vm214_vm0, %v329_v25, 0.0 }
  0x6d   : > { %v314_v32 = vadd.f32 %v313_v24, %v312_v23  ;;  %v331_v33 = vrot.slane %v330_v31, 4  ;;  %v256_v34 = vrot.slane %v255_v26, 2  ;;  %v261_v35 = vrot.slane %v260_v27, 4  ;;  %v510_v24 = vld [vmem:[%s853_s30 + $0x4] sm:$0xf] }
  0x6e   : > { %v249_v36 = vrot.slane %v248_v28, 2  ;;  %v279_v37 = vrot.slane %v278_v29, 2  ;;  %v297_v38 = vrot.slane %v296_v30, 2  ;;  %v267_v39 = vsel %vm214_vm0, %v245_v9, 0.0 }
  0x6f   : > { %v315_v40 = vrot.slane %v314_v32, 2  ;;  %v332_v8 = vadd.f32 %v331_v33, %v330_v31  ;;  %v257_v41 = vadd.f32 %v256_v34, %v255_v26  ;;  %v262_v42 = vadd.f32 %v261_v35, %v260_v27 }
  0x70   : > { %v250_v43 = vadd.f32 %v249_v36, %v248_v28  ;;  %v280_v44 = vadd.f32 %v279_v37, %v278_v29  ;;  %v298_v45 = vadd.f32 %v297_v38, %v296_v30  ;;  %v268_v46 = vrot.slane %v267_v39, 4 }
  0x71   : > { %v316_v47 = vadd.f32 %v315_v40, %v314_v32  ;;  %v333_v48 = vrot.slane %v332_v8, 2  ;;  %v258_v49 = vrot.slane %v257_v41, 1  ;;  %v263_v50 = vrot.slane %v262_v42, 2 }
  0x72   : > { %v251_v51 = vrot.slane %v250_v43, 1  ;;  %v281_v52 = vrot.slane %v280_v44, 1  ;;  %v299_v53 = vrot.slane %v298_v45, 1  ;;  %v269_v54 = vadd.f32 %v268_v46, %v267_v39 }
  0x73   : > { %v317_v55 = vrot.slane %v316_v47, 1  ;;  %v334_v56 = vadd.f32 %v333_v48, %v332_v8  ;;  %v259_v57 = vadd.f32 %v258_v49, %v257_v41  ;;  %v264_v58 = vadd.f32 %v263_v50, %v262_v42 }
  0x74   : > { %v252_v59 = vadd.f32 %v251_v51, %v250_v43  ;;  %v282_v60 = vadd.f32 %v281_v52, %v280_v44  ;;  %v300_v61 = vadd.f32 %v299_v53, %v298_v45  ;;  %v270_v62 = vrot.slane %v269_v54, 2 }
  0x75   : > { %v318_v63 = vadd.f32 %v317_v55, %v316_v47  ;;  %v335_v0 = vrot.slane %v334_v56, 1  ;;  %v265_v1 = vrot.slane %v264_v58, 1  ;;  %v363_v2 = vadd.f32 %v355_v10, %v259_v57 }
  0x76   : > { %v347_v4 = vsel %vm346_vm5, %v282_v60, %v300_v61  ;;  %v362_v5 = vadd.f32 %v890_v3, %v252_v59  ;;  %v271_v6 = vadd.f32 %v270_v62, %v269_v54  ;;  %v357_v16 = vrot.slane %v890_v3, 3 }
  0x77   : > { %v336_v7 = vadd.f32 %v335_v0, %v334_v56  ;;  %v348_v9 = vsel %vm214_vm0, %v347_v4, %v318_v63  ;;  %v266_v13 = vadd.f32 %v265_v1, %v264_v58  ;;  %v375_v14 = vrot.slane %v363_v2, 7 }
  0x78   : > { %v272_v15 = vrot.slane %v271_v6, 1 }
  0x79   : > { %v350_v10 = vsel %vm349_vm6, %v348_v9, %v336_v7  ;;  %v364_v17 = vadd.f32 %v356_v11, %v266_v13  ;;  %v377_v20 = vsel %vm376_vm7, %v375_v14, %v362_v5 }
  0x7a   : > { %v367_v18 = vadd.f32 %v366_v12, %v350_v10  ;;  %v273_v19 = vadd.f32 %v272_v15, %v271_v6 }
  0x7b   : > { %v378_v21 = vrot.slane %v364_v17, 6 }
  0x7c   : > { %368 = vst [vmem:[%s853_s30] sm:$0xf] %v367_v18  ;;  %v365_v22 = vadd.f32 %v357_v16, %v273_v19 }
  0x7d   : > { %v380_v23 = vsel %vm379_vm8, %v378_v21, %v377_v20 }
  0x7e   : > { %v381_v25 = vrot.slane %v365_v22, 5 }
  0x80   : > { %v383_v26 = vsel %vm382_vm9, %v381_v25, %v380_v23 }
  0x81   : > { %v385_v3 = vadd.f32 %v510_v24, %v383_v26 }
  0x83   : > { %511 = vst [vmem:[%s853_s30 + $0x4] sm:$0xf] %v385_v3 }
  0x84   : > { %639 = shalt.err (!%p636_p4)
}
  0x85   : > { %s640_s7 = scalar_lea.hbm %s925_s25, 128  ;;  %s644_s30 = scalar_lea.hbm %s979_s2, 256 }
  0x86   : > { %p641_p7 = scmp.ne.s32.totalorder %s925_s25, %s640_s7  ;;  %p645_p1 = scmp.lt.u32.totalorder %s925_s25, %s979_s2 }
  0x87   : > { %p646_p3 = scmp.lt.u32.totalorder %s644_s30, %s640_s7  ;;  %p648_p8 = scmp.lt.u32.totalorder %s640_s7, %s925_s25 }
  0x88   : > { %p642_p10 = pnand %p641_p7, %p987_p11 }
  0x89   : > { %p647_p9 = por %p646_p3, %p645_p1 }
  0x8a   : > { %p643_p12 = pneg %p642_p10 }
  0x8b   : > { %p649_p0 = por %p648_p8, %p647_p9 }
  0x8d   : > { %p650_p6 = pnand %p649_p0, %p643_p12 }
  0x8f   : > { %653 = shalt.err (!%p650_p6)
}
  0x90   : > { %s715_s6 = smov 64   ;;  %s716_s16 = smov 4  }
  0x91   : > { %521 = dma.vmem_to_hbm [thread:$0]  (%p987_p11), %s927_s18, 128, %s925_s25, %s388_s26, %s715_s6, %s715_s6, %s716_s16  }
  0x92 PF: > { %s416_s21 = sand.u32 1, %s688_s9   ;;  %p988_p13 = scmp.ne.s32.totalorder %s984_s24, 0 }
  0x93   : > { %p989_p2 = scmp.ge.s32.totalorder %s708_s14, 2  ;;  %s417_s19 = scalar_lea.sflag [#allocation4], %s416_s21 }
  0x95   : > { %p528_p5 = pnand %p989_p2, %p988_p13 }
  0x97   : > { %683 = dma.done.wait (!%p528_p5), %s417_s19, 128  }
  0x98   : > { %685 = vsyncadd (!%p528_p5), %s417_s19, 4294967168  ;;  %s18_s14 = sadd.s32 1, %s708_s14   ;;  %s990_s9 = smov %s692_s10 }
  0x99   : > { %p15_p4 = scmp.ge.s32.totalorder %s18_s14, 4   ;;  %s991_s10 = smov %s696_s11 }
  0x9a   : > { %s992_s11 = smov %s788_s23  ;;  %s993_s12 = smov %s704_s13 }
  0x9b   : > { %s994_s13 = smov %s996_s17  ;;  %17 = sbr.rel (!%p15_p4) target bundleno = 6 (0x6), region = 81 }
  0xa2   :  { %422 = vsyncpa [#allocation3], 1 }
  0xa3   :  { %424 = vsyncpa [#allocation3 + $0x1], 1 }
  0xa4   :  { %425 = vsyncpa [#allocation4], 1 }
  0xa5   :  { %427 = vsyncpa [#allocation4 + $0x1], 1 }

</bundles_post_ra>
